<compile_context>
chip_gen: v5e
topology: v5e:2x2
jax: 0.10.0
libtpu: 0.0.40
codegen_flags: <defaults>
</compile_context>

<pallas_src>
import jax
import jax.numpy as jnp
from jax.experimental import pallas as pl
from jax.experimental.pallas import tpu as pltpu

_LANE = 128


def _mu_sigma_kernel(x_ref, wt_ref, b_ref, out_ref):
    # x_ref:   (TB, F)   native dtype (f32 or bf16)
    # wt_ref:  (2, F)    rows: [w_mu, w_sigma]   (resident across the grid)
    # b_ref:   (2,)      SMEM scalars [b_mu, b_sigma]
    # out_ref: (2, TB)   f32; row 0 = mu, row 1 = sigma (lane-dense batch axis)
    x = x_ref[...]
    wt = wt_ref[...].astype(x.dtype)
    # "NT" matmul: both operands contract their lane (feature) axis, producing
    # (2, TB) directly so the batch tile lands on the lane axis and the output
    # stores are unmasked along lanes. f32 accumulation on the MXU.
    z = jax.lax.dot_general(
        wt, x,
        dimension_numbers=(((1,), (1,)), ((), ())),
        preferred_element_type=jnp.float32,
    )  # (2, TB) f32
    out_ref[0:1, :] = z[0:1, :] + b_ref[0]
    # softplus keeps sigma strictly positive (EUP exp + VPU log1p, post-MXU f32).
    out_ref[1:2, :] = jax.nn.softplus(z[1:2, :] + b_ref[1])


def _pick_batch_tile(batch: int, feature_dim: int, itemsize: int) -> int:
    """Largest batch tile that keeps double-buffered x DMAs well inside VMEM.

    Budget 2 (double-buffer) * TB * F * itemsize <= ~12 MiB, which leaves
    plenty of headroom (resident weights + (2, TB) output buffers) under the
    32 MiB scoped limit on every generation, including v7x's 64 MiB physical.
    """
    budget = 12 * 1024 * 1024
    tb = budget // max(2 * feature_dim * itemsize, 1)
    tb = (tb // _LANE) * _LANE
    tb = max(_LANE, min(tb, 1024))
    if batch <= tb:
        # Single block: full-extent block dims satisfy the (8,128) rule for
        # any batch size.
        return batch
    # Tiled path: TB is a multiple of 128, so a partial last block is legal;
    # padded rows flow through dot+softplus and are dropped on masked
    # writeback (no cross-row reductions in this head).
    return tb


class MuSigmaCBModel:
    """JAX/Pallas port of the Pearl MuSigmaCBModel contract.

    forward(x) -> (mu, sigma): mu is the expected reward, sigma is the
    standard deviation of the prediction uncertainty. Linear head + softplus.
    """

    def __init__(self, feature_dim: int, key: jax.Array) -> None:
        self._feature_dim = feature_dim
        k_w, k_b = jax.random.split(key)
        # Deterministic synthetic parameters (no checkpoint loading).
        self.w = (jax.random.normal(k_w, (feature_dim, 2), dtype=jnp.float32)
                  / jnp.sqrt(jnp.float32(feature_dim)))
        self.b = 0.01 * jax.random.normal(k_b, (2,), dtype=jnp.float32)
        # Pre-transposed weight (2, F), materialized once at init so there is
        # no per-forward transpose op.
        self._w_t = jnp.asarray(self.w.T)

    def forward(self, x: jax.Array):
        assert x.ndim == 2 and x.shape[1] == self._feature_dim
        batch, fdim = x.shape
        tb = _pick_batch_tile(batch, fdim, x.dtype.itemsize)
        grid = (pl.cdiv(batch, tb),)

        cost = pl.CostEstimate(
            flops=4 * batch * fdim,                 # 2 output heads * 2*B*F
            transcendentals=batch,                  # one exp per sigma
            bytes_accessed=(x.size * x.dtype.itemsize
                            + self._w_t.size * 4
                            + self.b.size * 4
                            + 2 * batch * 4),
        )

        out = pl.pallas_call(
            _mu_sigma_kernel,
            out_shape=jax.ShapeDtypeStruct((2, batch), jnp.float32),
            grid=grid,
            in_specs=[
                # x: tiled along batch, pipelined/double-buffered.
                pl.BlockSpec((tb, fdim), lambda i: (i, 0)),
                # weights: resident across all grid steps.
                pl.BlockSpec((2, fdim), lambda i: (0, 0)),
                # bias: two scalars in SMEM (no padded VMEM tile).
                pl.BlockSpec(memory_space=pltpu.MemorySpace.SMEM),
            ],
            # Fused lane-dense output: batch on the lane axis.
            out_specs=pl.BlockSpec((2, tb), lambda i: (0, i)),
            compiler_params=pltpu.CompilerParams(
                dimension_semantics=("parallel",),   # v7x: shard over 2 TCs
                vmem_limit_bytes=32 * 1024 * 1024,
            ),
            cost_estimate=cost,
        )(x, self._w_t, self.b)

        mu = out[0, :, None]       # (B, 1)
        sigma = out[1, :, None]    # (B, 1)
        return mu, sigma

    def __call__(self, x: jax.Array):
        return self.forward(x)


def _reference(x, w, b):
    z = x @ w + b[None, :]
    return z[:, 0:1], jax.nn.softplus(z[:, 1:2])


if __name__ == "__main__":
    key = jax.random.PRNGKey(0)
    k_param, k_x, k_x2 = jax.random.split(key, 3)

    # Small primary check.
    batch, feature_dim = 2, 32
    model = MuSigmaCBModel(feature_dim, k_param)
    x = jax.random.normal(k_x, (batch, feature_dim), dtype=jnp.float32)

    mu, sigma = model(x)
    jax.block_until_ready((mu, sigma))

    mu_ref, sigma_ref = _reference(x, model.w, model.b)
    assert jnp.allclose(mu, mu_ref, atol=1e-5, rtol=1e-5)
    assert jnp.allclose(sigma, sigma_ref, atol=1e-5, rtol=1e-5)
    assert bool(jnp.all(sigma > 0))

    # Secondary check exercising the batch grid + partial last block
    # (batch=2304 > TB=1024 -> grid of 3 with a 256-row remainder).
    big_batch = 2304
    x2 = jax.random.normal(k_x2, (big_batch, feature_dim), dtype=jnp.float32)
    mu2, sigma2 = model(x2)
    jax.block_until_ready((mu2, sigma2))
    mu2_ref, sigma2_ref = _reference(x2, model.w, model.b)
    assert jnp.allclose(mu2, mu2_ref, atol=1e-5, rtol=1e-5)
    assert jnp.allclose(sigma2, sigma2_ref, atol=1e-5, rtol=1e-5)

    print("KERNEL_OK")
</pallas_src>

<mosaic_0001>
module attributes {stable_mosaic.version = 11 : i64} {
  func.func @_mu_sigma_kernel(%arg0: i32, %arg1: memref<2x32xf32, #tpu.memory_space<vmem>>, %arg2: memref<2x32xf32, #tpu.memory_space<vmem>>, %arg3: memref<2xf32, #tpu.memory_space<smem>>, %arg4: memref<2x2xf32, #tpu.memory_space<vmem>>) attributes {dimension_semantics = [#tpu.dimension_semantics<parallel>], iteration_bounds = array<i64: 1>, scalar_prefetch = 0 : i64, scratch_operands = 0 : i64, tpu.core_type = #tpu.core_type<tc>, window_params = [{transform_indices = @transform_0, window_bounds = array<i64: 2, 32>}, {pipeline_mode = #tpu.pipeline_mode<synchronous>, transform_indices = @transform_1, window_bounds = array<i64: 2, 32>}, {transform_indices = @transform_2, window_bounds = array<i64: 2>}, {transform_indices = @transform_3, window_bounds = array<i64: 2, 2>}]} {
    %c0 = arith.constant 0 : index
    %c0_0 = arith.constant 0 : index
    %0 = vector.load %arg1[%c0, %c0_0] : memref<2x32xf32, #tpu.memory_space<vmem>>, vector<2x32xf32>
    %c0_1 = arith.constant 0 : index
    %c0_2 = arith.constant 0 : index
    %1 = vector.load %arg2[%c0_1, %c0_2] : memref<2x32xf32, #tpu.memory_space<vmem>>, vector<2x32xf32>
    %cst = arith.constant dense<0.000000e+00> : vector<2x2xf32>
    %2 = tpu.matmul %1, %0, %cst {dimension_numbers = #tpu.dot_dimension_numbers<[1], [1], [0], [0], [0, 0, 1, 0], [], []>} : vector<2x32xf32>, vector<2x32xf32>, vector<2x2xf32> -> vector<2x2xf32>
    %3 = vector.extract_strided_slice %2 {offsets = [0, 0], sizes = [1, 2], strides = [1, 1]} : vector<2x2xf32> to vector<1x2xf32>
    %c0_3 = arith.constant 0 : index
    %4 = memref.load %arg3[%c0_3] : memref<2xf32, #tpu.memory_space<smem>>
    %5 = vector.broadcast %4 : f32 to vector<1x2xf32>
    %6 = arith.addf %3, %5 : vector<1x2xf32>
    %c0_4 = arith.constant 0 : index
    %c0_5 = arith.constant 0 : index
    %7 = vector.load %arg4[%c0_4, %c0_5] : memref<2x2xf32, #tpu.memory_space<vmem>>, vector<1x2xf32>
    tpu.vector_store %arg4[%c0_4, %c0_5], %6 {strides = array<i32>} : memref<2x2xf32, #tpu.memory_space<vmem>>, vector<1x2xf32>,
    %8 = vector.extract_strided_slice %2 {offsets = [1, 0], sizes = [1, 2], strides = [1, 1]} : vector<2x2xf32> to vector<1x2xf32>
    %c1 = arith.constant 1 : index
    %9 = memref.load %arg3[%c1] : memref<2xf32, #tpu.memory_space<smem>>
    %10 = vector.broadcast %9 : f32 to vector<1x2xf32>
    %11 = arith.addf %8, %10 : vector<1x2xf32>
    %cst_6 = arith.constant 0.000000e+00 : f32
    %12 = vector.broadcast %cst_6 : f32 to vector<1x2xf32>
    %13 = arith.maximumf %11, %12 : vector<1x2xf32>
    %14 = vector.broadcast %cst_6 : f32 to vector<1x2xf32>
    %15 = arith.subf %11, %14 : vector<1x2xf32>
    %16 = arith.cmpf one, %15, %15 : vector<1x2xf32>
    %17 = vector.broadcast %cst_6 : f32 to vector<1x2xf32>
    %18 = arith.addf %11, %17 : vector<1x2xf32>
    %19 = math.absf %15 : vector<1x2xf32>
    %cst_7 = arith.constant 0.000000e+00 : f32
    %20 = vector.broadcast %cst_7 : f32 to vector<1x2xf32>
    %21 = arith.subf %20, %19 : vector<1x2xf32>
    %22 = math.exp %21 : vector<1x2xf32>
    %23 = math.log1p %22 : vector<1x2xf32>
    %24 = arith.addf %13, %23 : vector<1x2xf32>
    %25 = arith.select %16, %18, %24 : vector<1x2xi1>, vector<1x2xf32>
    %c1_8 = arith.constant 1 : index
    %c0_9 = arith.constant 0 : index
    %26 = vector.load %arg4[%c1_8, %c0_9] : memref<2x2xf32, #tpu.memory_space<vmem>>, vector<1x2xf32>
    tpu.vector_store %arg4[%c1_8, %c0_9], %25 {strides = array<i32>} : memref<2x2xf32, #tpu.memory_space<vmem>>, vector<1x2xf32>,
    return
  }
  func.func @transform_0(%arg0: i32) -> (i32, i32) {
    %c0_i32 = arith.constant 0 : i32
    %c0_i32_0 = arith.constant 0 : i32
    return %arg0, %c0_i32 : i32, i32
  }
  func.func @transform_1(%arg0: i32) -> (i32, i32) {
    %c0_i32 = arith.constant 0 : i32
    %c0_i32_0 = arith.constant 0 : i32
    %c0_i32_1 = arith.constant 0 : i32
    return %c0_i32, %c0_i32_0 : i32, i32
  }
  func.func @transform_2(%arg0: i32) -> i32 {
    %c0_i32 = arith.constant 0 : i32
    %c0_i32_0 = arith.constant 0 : i32
    return %c0_i32 : i32
  }
  func.func @transform_3(%arg0: i32) -> (i32, i32) {
    %c0_i32 = arith.constant 0 : i32
    %c0_i32_0 = arith.constant 0 : i32
    return %c0_i32, %arg0 : i32, i32
  }
}

</mosaic_0001>

<bundles_post_ra>
// kernel: tpu_custom_call.1
= control target key start
LH: loop header
LB: loop body
LE: loop exit
PB: predicated region body
PF: predicated region fallthrough
CT: control target
= control target key end

     0   :  { %8 = vsyncpa [#allocation3], 0  ;;  %s271_s0 = inlined_call_operand.hbm [shape: f32[2,32], index: 0, kind: input, shape index: {}]   ;;  %s272_s1 = inlined_call_operand.hbm [shape: f32[2,32], index: 1, kind: input, shape index: {}]   ;;  %s273_s2 = inlined_call_operand.vmem [shape: f32[2], index: 2, kind: input, shape index: {}]   ;;  %s274_s3 = inlined_call_operand.hbm [shape: f32[2,2], index: 3, kind: output, shape index: {}]  }
   0x1   :  { %9 = vsyncpa [#allocation7], 0 }
   0x2   :  { %10 = vsyncpa [#allocation5], 0 }
   0x3   :  { %11 = vsyncpa [#allocation4], 0  ;;  %s17_s14 = sshll.u32 %s271_s0, 4  ;;  %s235_s15 = smov [#allocation2]   ;;  %s18_s14 = int_to_ptr.hbm [resolvable:$true] %s17_s14 }
   0x4   :  { %s19_s16 = sshll.u32 %s235_s15, 4  ;;  %s28_s19 = sshll.u32 %s272_s1, 4  ;;  %s20_s16 = int_to_ptr.vmem [resolvable:$true] %s19_s16  ;;  %s29_s19 = int_to_ptr.hbm [resolvable:$true] %s28_s19 }
   0x5   :  { %22 = dma.hbm_to_vmem [thread:$0]  %s18_s14, 32, %s20_s16, [#allocation3]  }
   0x6   :  { %s236_s20 = smov [#allocation6]   ;;  %s39_s24 = sshll.u32 %s273_s2, 4  ;;  %s40_s24 = int_to_ptr.vmem [resolvable:$true] %s39_s24 }
   0x7   :  { %s30_s21 = sshll.u32 %s236_s20, 4  ;;  %s237_s0 = smov [#allocation8]   ;;  %s31_s21 = int_to_ptr.vmem [resolvable:$true] %s30_s21 }
   0x8   :  { %33 = dma.hbm_to_vmem [thread:$0]  %s29_s19, 32, %s31_s21, [#allocation7]  }
   0x9   :  { %42 = dma.vmem_to_smem %s40_s24, 16, %s237_s0, [#allocation5]  }
   0xa   :  { %227 = dma.done.wait [#allocation3], 32  }
   0xb   :  { %228 = vsyncadd [#allocation3], 4294967264 }
   0xc   :  { %229 = dma.done.wait [#allocation7], 32  }
   0xd   :  { %230 = vsyncadd [#allocation7], 4294967264 }
   0xe   :  { %231 = dma.done.wait [#allocation5], 16  }
   0xf   :  { %232 = vsyncadd [#allocation5], 4294967280 }
  0x10   :  { %55 = sfence }
  0x11   :  { %v56_v0 = vld [vmem:[#allocation2] sm:$0x3]  ;;  %vm58_vm0 = vcmask 261120   ;;  %v57_v1 = vld [vmem:[#allocation6] sm:$0x3]  ;;  %s85_s1 = sld [smem:[#allocation8]] }
  0x12   :  { %132 = vmatpush.xpose.msk.msra.mxu0 %vm58_vm0, %v56_v0  ;;  %s134_s25 = sld [smem:[#allocation8 + $0x1]]  ;;  %vm88_vm1 = vcmask 8192   ;;  %s238_s2 = smov [#allocation9]   ;;  %vm111_vm3 = vcmask 9217  }
  0x13   :  { %s118_s26 = sshll.u32 %s238_s2, 4  ;;  %s120_s29 = sshll.u32 %s274_s3, 4  ;;  %s119_s26 = int_to_ptr.vmem [resolvable:$true] %s118_s26  ;;  %s121_s29 = int_to_ptr.hbm [resolvable:$true] %s120_s29 }
  0x15   :  { %133 = vmatmul.msk.f32.vlgmr.msra.gmra.mxu0 %vm58_vm0, %v57_v1 }
  0x17   :  { %v86_v2 = vstv %s85_s1 }
  0x18   :  { %v91_v3 = vstv %s134_s25 }
  0x92   :  { %v82_v4 = vpop.f32.mrf.mxu0 }
  0x93   :  { %v87_v5 = vadd.f32 %v86_v2, %v82_v4  ;;  %v92_v6 = vadd.f32 %v91_v3, %v82_v4 }
  0x95   :  { %89 = vst.msk [vmem:[#allocation9] sm:$0x1] %vm88_vm1, %v87_v5  ;;  %v96_v7 = vand.u32 2147483647, %v92_v6  ;;  %v93_v18 = vmax.f32 %v92_v6, 0.0  ;;  %vm94_vm4 = vcmp.ne.f32.partialorder %v92_v6, %v92_v6 }
  0x97   :  { %v97_v8 = vsub.f32 0.0, %v96_v7 }
  0x99   :  { %v98_v9 = vmul.f32 1.442695, %v97_v8 }
  0x9b   :  { %139 = vpow2.f32 %v98_v9 }
  0xa1   :  { %v140_v10 = vpop.eup %139 }
  0xa2   :  { %v100_v11 = vadd.f32 1.0, %v140_v10  ;;  %v103_v12 = vmul.f32 -0.5, %v140_v10  ;;  %v106_v14 = vand.u32 2147483647, %v140_v10 }
  0xa4   :  { %141 = vlog2.f32 %v100_v11  ;;  %v104_v13 = vadd.f32 1.0, %v103_v12  ;;  %vm107_vm2 = vcmp.lt.f32.partialorder %v106_v14, 0.0004427343 }
  0xa6   :  { %v105_v17 = vmul.f32 %v140_v10, %v104_v13 }
  0xaa   :  { %v142_v15 = vpop.eup %141 }
  0xab   :  { %v102_v16 = vmul.f32 0.6931472, %v142_v15 }
  0xad   :  { %v108_v19 = vsel %vm107_vm2, %v105_v17, %v102_v16 }
  0xae   :  { %v109_v20 = vadd.f32 %v108_v19, %v93_v18 }
  0xb0   :  { %v110_v21 = vsel %vm94_vm4, %v92_v6, %v109_v20 }
  0xb1   :  { %112 = vst.msk [vmem:[#allocation9] sm:$0x2] %vm111_vm3, %v110_v21 }
  0xb2   :  { %123 = dma.vmem_to_hbm [thread:$0]  %s119_s26, 32, %s121_s29, [#allocation4]  }
  0xb3   :  { %233 = dma.done.wait [#allocation4], 32  }
  0xb4   :  { %234 = vsyncadd [#allocation4], 4294967264 }
  0xb5   :  { %128 = vsyncpa [#allocation3], 1 }
  0xb6   :  { %129 = vsyncpa [#allocation7], 1 }
  0xb7   :  { %130 = vsyncpa [#allocation4], 1 }
  0xb8   :  { %131 = vsyncpa [#allocation5], 1 }

</bundles_post_ra>
